<compile_context>
chip_gen: v7x
topology: tpu7x:2x2x1
jax: 0.10.0
libtpu: 0.0.40
codegen_flags: <defaults>
</compile_context>

<pallas_src>
import functools

import jax
import jax.numpy as jnp
from jax.experimental import pallas as pl
from jax.experimental.pallas import tpu as pltpu


def _memory_block_kernel(w_ref, b_ref, x_ref, o_ref, *, neg_slope, cin):
    # w_ref: (Cout, Cin), b_ref: (Cout, 1), x_ref: (Cin, TL), o_ref: (Cout, TL)
    x = x_ref[...]
    w = w_ref[...]
    # Tiny contraction done on the VPU as Cin broadcast-FMAs (no MXU padding).
    y = b_ref[...] + w[:, 0:1] * x[0:1, :]
    for ci in range(1, cin):
        y = y + w[:, ci:ci + 1] * x[ci:ci + 1, :]
    o_ref[...] = jnp.where(y >= 0, y, neg_slope * y)          # LeakyReLU(0.01)


def _memory_block_kernel_skip(w_ref, b_ref, x_ref, skip_ref, o_ref, *,
                              neg_slope, cin):
    # Same as above, plus fused skip_data + spring(x).
    x = x_ref[...]
    w = w_ref[...]
    y = b_ref[...] + w[:, 0:1] * x[0:1, :]
    for ci in range(1, cin):
        y = y + w[:, ci:ci + 1] * x[ci:ci + 1, :]
    o_ref[...] = skip_ref[...] + jnp.where(y >= 0, y, neg_slope * y)


def _pick_lane_tile(spatial, max_tl=4096):
    """Largest lane tile that is a multiple of 128 and divides H*W (or H*W itself)."""
    if spatial <= max_tl:
        return spatial                      # full extent: always layout-legal
    for tl in (4096, 2048, 1024, 512, 384, 256, 128):
        if tl <= max_tl and spatial % tl == 0:
            return tl
    # TODO(synk): ragged H*W larger than max_tl falls back to one full-length
    # block; a masked tail block would be better for very large odd extents.
    return spatial


def memory_block_forward(x_nchw, params, skip_data=None, *, max_lane_tile=4096):
    """Fused MemoryBlock forward (eval mode: BN running stats, dropout identity).

    x_nchw:    (N, Cin, H, W) float32
    params:    dict with conv_w (Cout, Cin), bn gamma/beta/mean/var (Cout,)
    skip_data: optional (N, Cout, H, W) float32
    returns:   (N, Cout, H, W) float32
    """
    n, cin, h, w_sp = x_nchw.shape
    cout = params["conv_w"].shape[0]
    eps = 1e-5
    neg_slope = 0.01                        # PyTorch LeakyReLU default

    spatial = h * w_sp
    tl = _pick_lane_tile(spatial, max_lane_tile)
    grid = (n, spatial // tl)

    # Fold BatchNorm (eval) into the 1x1 conv:
    #   y = gamma * (W x - mean) / sqrt(var + eps) + beta
    #     = (W * s) x + (beta - mean * s),   s = gamma / sqrt(var + eps)
    s = params["bn_gamma"] / jnp.sqrt(params["bn_var"] + eps)            # (Cout,)
    w_eff = (params["conv_w"] * s[:, None]).astype(jnp.float32)          # (Cout, Cin)
    b_eff = (params["bn_beta"] - params["bn_mean"] * s
             ).reshape(cout, 1).astype(jnp.float32)                      # (Cout, 1)

    # NCHW-native: only a (free) reshape, channels on sublanes, spatial on lanes.
    x3d = x_nchw.reshape(n, cin, spatial).astype(jnp.float32)            # (N, Cin, HW)

    w_spec = pl.BlockSpec((cout, cin), lambda ni, li: (0, 0))
    b_spec = pl.BlockSpec((cout, 1), lambda ni, li: (0, 0))
    x_spec = pl.BlockSpec((None, cin, tl), lambda ni, li: (ni, 0, li))
    o_spec = pl.BlockSpec((None, cout, tl), lambda ni, li: (ni, 0, li))

    flops = 2 * n * spatial * cin * cout
    bytes_accessed = (x3d.size + n * cout * spatial
                      + w_eff.size + b_eff.size) * 4

    compiler_params = pltpu.CompilerParams(
        dimension_semantics=("parallel", "parallel"))

    if skip_data is not None:
        skip3d = skip_data.reshape(n, cout, spatial).astype(jnp.float32)
        out3d = pl.pallas_call(
            functools.partial(_memory_block_kernel_skip,
                              neg_slope=neg_slope, cin=cin),
            out_shape=jax.ShapeDtypeStruct((n, cout, spatial), jnp.float32),
            grid=grid,
            in_specs=[w_spec, b_spec, x_spec,
                      pl.BlockSpec((None, cout, tl), lambda ni, li: (ni, 0, li))],
            out_specs=o_spec,
            compiler_params=compiler_params,
            cost_estimate=pl.CostEstimate(
                flops=flops, transcendentals=0,
                bytes_accessed=bytes_accessed + n * cout * spatial * 4),
        )(w_eff, b_eff, x3d, skip3d)
    else:
        out3d = pl.pallas_call(
            functools.partial(_memory_block_kernel,
                              neg_slope=neg_slope, cin=cin),
            out_shape=jax.ShapeDtypeStruct((n, cout, spatial), jnp.float32),
            grid=grid,
            in_specs=[w_spec, b_spec, x_spec],
            out_specs=o_spec,
            compiler_params=compiler_params,
            cost_estimate=pl.CostEstimate(
                flops=flops, transcendentals=0,
                bytes_accessed=bytes_accessed),
        )(w_eff, b_eff, x3d)

    return out3d.reshape(n, cout, h, w_sp)


def _reference_forward(x_nchw, params, skip_data=None):
    """Plain-JAX NCHW reference (same eval-mode semantics), no MXU involved."""
    eps = 1e-5
    s = params["bn_gamma"] / jnp.sqrt(params["bn_var"] + eps)            # (Cout,)
    w_eff = params["conv_w"] * s[:, None]                                # (Cout, Cin)
    b_eff = params["bn_beta"] - params["bn_mean"] * s                    # (Cout,)
    # 1x1 conv as an explicit broadcast-sum (exact f32, matches kernel math).
    y = (w_eff[None, :, :, None, None] * x_nchw[:, None, :, :, :]).sum(axis=2)
    y = y + b_eff[None, :, None, None]
    y = jnp.where(y >= 0, y, 0.01 * y)                                   # LeakyReLU
    # Dropout is identity in eval mode.
    if skip_data is not None:
        y = skip_data + y
    return y


if __name__ == "__main__":
    # Small shapes consistent with the module: batch=2, in=4, out=8, 16x16 spatial.
    N, CIN, COUT, H, W = 2, 4, 8, 16, 16

    key = jax.random.PRNGKey(0)
    k1, k2, k3, k4, k5 = jax.random.split(key, 5)

    params = {
        "conv_w": jax.random.normal(k1, (COUT, CIN), dtype=jnp.float32) * 0.1,
        "bn_gamma": 1.0 + 0.1 * jax.random.normal(k2, (COUT,), dtype=jnp.float32),
        "bn_beta": 0.1 * jax.random.normal(k3, (COUT,), dtype=jnp.float32),
        "bn_mean": 0.05 * jax.random.normal(k4, (COUT,), dtype=jnp.float32),
        "bn_var": jnp.abs(0.5 + 0.1 * jax.random.normal(k5, (COUT,), dtype=jnp.float32)),
    }

    kx, ks = jax.random.split(jax.random.PRNGKey(0), 2)
    x = jax.random.normal(kx, (N, CIN, H, W), dtype=jnp.float32)
    skip = jax.random.normal(ks, (N, COUT, H, W), dtype=jnp.float32)

    # skip=False path
    out_noskip = memory_block_forward(x, params, skip_data=None)
    jax.block_until_ready(out_noskip)

    # skip=True path
    out_skip = memory_block_forward(x, params, skip_data=skip)
    jax.block_until_ready(out_skip)

    # Verify against plain-JAX reference.
    ref_noskip = _reference_forward(x, params, None)
    ref_skip = _reference_forward(x, params, skip)
    assert jnp.allclose(out_noskip, ref_noskip, atol=1e-5, rtol=1e-5)
    assert jnp.allclose(out_skip, ref_skip, atol=1e-5, rtol=1e-5)

    print("KERNEL_OK")
</pallas_src>

<mosaic_0001>
module attributes {stable_mosaic.version = 11 : i64} {
  func.func @_memory_block_kernel(%arg0: i32, %arg1: i32, %arg2: memref<8x4xf32, #tpu.memory_space<vmem>>, %arg3: memref<8x1xf32, #tpu.memory_space<vmem>>, %arg4: memref<1x4x256xf32, #tpu.memory_space<vmem>>, %arg5: memref<1x8x256xf32, #tpu.memory_space<vmem>>) attributes {dimension_semantics = [#tpu.dimension_semantics<parallel>, #tpu.dimension_semantics<parallel>], iteration_bounds = array<i64: 2, 1>, scalar_prefetch = 0 : i64, scratch_operands = 0 : i64, tpu.core_type = #tpu.core_type<tc>, window_params = [{pipeline_mode = #tpu.pipeline_mode<synchronous>, transform_indices = @transform_0, window_bounds = array<i64: 8, 4>}, {pipeline_mode = #tpu.pipeline_mode<synchronous>, transform_indices = @transform_1, window_bounds = array<i64: 8, 1>}, {transform_indices = @transform_2, window_bounds = array<i64: 1, 4, 256>}, {transform_indices = @transform_3, window_bounds = array<i64: 1, 8, 256>}]} {
    %c0 = arith.constant 0 : index
    %c0_0 = arith.constant 0 : index
    %c0_1 = arith.constant 0 : index
    %0 = vector.load %arg4[%c0, %c0_0, %c0_1] : memref<1x4x256xf32, #tpu.memory_space<vmem>>, vector<1x4x256xf32>
    %1 = vector.shape_cast %0 : vector<1x4x256xf32> to vector<4x256xf32>
    %c0_2 = arith.constant 0 : index
    %c0_3 = arith.constant 0 : index
    %2 = vector.load %arg2[%c0_2, %c0_3] : memref<8x4xf32, #tpu.memory_space<vmem>>, vector<8x4xf32>
    %c0_4 = arith.constant 0 : index
    %c0_5 = arith.constant 0 : index
    %3 = vector.load %arg3[%c0_4, %c0_5] : memref<8x1xf32, #tpu.memory_space<vmem>>, vector<8x1xf32>
    %4 = vector.extract_strided_slice %2 {offsets = [0, 0], sizes = [8, 1], strides = [1, 1]} : vector<8x4xf32> to vector<8x1xf32>
    %5 = vector.extract_strided_slice %1 {offsets = [0, 0], sizes = [1, 256], strides = [1, 1]} : vector<4x256xf32> to vector<1x256xf32>
    %6 = vector.broadcast %4 : vector<8x1xf32> to vector<8x256xf32>
    %7 = vector.broadcast %5 : vector<1x256xf32> to vector<8x256xf32>
    %8 = arith.mulf %6, %7 : vector<8x256xf32>
    %9 = vector.broadcast %3 : vector<8x1xf32> to vector<8x256xf32>
    %10 = arith.addf %9, %8 : vector<8x256xf32>
    %11 = vector.extract_strided_slice %2 {offsets = [0, 1], sizes = [8, 1], strides = [1, 1]} : vector<8x4xf32> to vector<8x1xf32>
    %12 = vector.extract_strided_slice %1 {offsets = [1, 0], sizes = [1, 256], strides = [1, 1]} : vector<4x256xf32> to vector<1x256xf32>
    %13 = vector.broadcast %11 : vector<8x1xf32> to vector<8x256xf32>
    %14 = vector.broadcast %12 : vector<1x256xf32> to vector<8x256xf32>
    %15 = arith.mulf %13, %14 : vector<8x256xf32>
    %16 = arith.addf %10, %15 : vector<8x256xf32>
    %17 = vector.extract_strided_slice %2 {offsets = [0, 2], sizes = [8, 1], strides = [1, 1]} : vector<8x4xf32> to vector<8x1xf32>
    %18 = vector.extract_strided_slice %1 {offsets = [2, 0], sizes = [1, 256], strides = [1, 1]} : vector<4x256xf32> to vector<1x256xf32>
    %19 = vector.broadcast %17 : vector<8x1xf32> to vector<8x256xf32>
    %20 = vector.broadcast %18 : vector<1x256xf32> to vector<8x256xf32>
    %21 = arith.mulf %19, %20 : vector<8x256xf32>
    %22 = arith.addf %16, %21 : vector<8x256xf32>
    %23 = vector.extract_strided_slice %2 {offsets = [0, 3], sizes = [8, 1], strides = [1, 1]} : vector<8x4xf32> to vector<8x1xf32>
    %24 = vector.extract_strided_slice %1 {offsets = [3, 0], sizes = [1, 256], strides = [1, 1]} : vector<4x256xf32> to vector<1x256xf32>
    %25 = vector.broadcast %23 : vector<8x1xf32> to vector<8x256xf32>
    %26 = vector.broadcast %24 : vector<1x256xf32> to vector<8x256xf32>
    %27 = arith.mulf %25, %26 : vector<8x256xf32>
    %28 = arith.addf %22, %27 : vector<8x256xf32>
    %cst = arith.constant 0.000000e+00 : f32
    %29 = vector.broadcast %cst : f32 to vector<8x256xf32>
    %30 = arith.cmpf oge, %28, %29 : vector<8x256xf32>
    %cst_6 = arith.constant 0.00999999977 : f32
    %31 = vector.broadcast %cst_6 : f32 to vector<8x256xf32>
    %32 = arith.mulf %31, %28 : vector<8x256xf32>
    %33 = arith.select %30, %28, %32 : vector<8x256xi1>, vector<8x256xf32>
    %c0_7 = arith.constant 0 : index
    %c0_8 = arith.constant 0 : index
    %c0_9 = arith.constant 0 : index
    %34 = vector.load %arg5[%c0_7, %c0_8, %c0_9] : memref<1x8x256xf32, #tpu.memory_space<vmem>>, vector<1x8x256xf32>
    %35 = vector.shape_cast %34 : vector<1x8x256xf32> to vector<8x256xf32>
    %36 = vector.shape_cast %33 : vector<8x256xf32> to vector<1x8x256xf32>
    tpu.vector_store %arg5[%c0_7, %c0_8, %c0_9], %36 {strides = array<i32>} : memref<1x8x256xf32, #tpu.memory_space<vmem>>, vector<1x8x256xf32>,
    return
  }
  func.func @transform_0(%arg0: i32, %arg1: i32) -> (i32, i32) {
    %c0_i32 = arith.constant 0 : i32
    %c0_i32_0 = arith.constant 0 : i32
    %c0_i32_1 = arith.constant 0 : i32
    return %c0_i32, %c0_i32_0 : i32, i32
  }
  func.func @transform_1(%arg0: i32, %arg1: i32) -> (i32, i32) {
    %c0_i32 = arith.constant 0 : i32
    %c0_i32_0 = arith.constant 0 : i32
    %c0_i32_1 = arith.constant 0 : i32
    return %c0_i32, %c0_i32_0 : i32, i32
  }
  func.func @transform_2(%arg0: i32, %arg1: i32) -> (i32, i32, i32) {
    %c0_i32 = arith.constant 0 : i32
    %c0_i32_0 = arith.constant 0 : i32
    return %arg0, %c0_i32, %arg1 : i32, i32, i32
  }
  func.func @transform_3(%arg0: i32, %arg1: i32) -> (i32, i32, i32) {
    %c0_i32 = arith.constant 0 : i32
    %c0_i32_0 = arith.constant 0 : i32
    return %arg0, %c0_i32, %arg1 : i32, i32, i32
  }
}

</mosaic_0001>

<bundles_post_ra>
// kernel: tpu_custom_call.1
= control target key start
LH: loop header
LB: loop body
LE: loop exit
PB: predicated region body
PF: predicated region fallthrough
CT: control target
= control target key end

     0   :  { %8 = vsyncpa [#allocation3], 0  ;;  %s720_s0 = inlined_call_operand.vmem [shape: f32[8,4], index: 0, kind: input, shape index: {}]   ;;  %s721_s1 = inlined_call_operand.vmem [shape: f32[8,1], index: 1, kind: input, shape index: {}]   ;;  %s722_s2 = inlined_call_operand.vmem [shape: f32[2,4,256], index: 2, kind: input, shape index: {}]   ;;  %s723_s3 = inlined_call_operand.hbm [shape: f32[2,8,256], index: 3, kind: output, shape index: {}]  }
   0x1   :  { %10 = vsyncpa [#allocation3 + $0x1], 0  ;;  %s598_s12 = smov 0   ;;  %s600_s13 = smov 0  }
   0x2   :  { %s602_s14 = smov 0   ;;  %s604_s15 = smov 0  }
   0x3   :  { %s606_s16 = smov 0   ;;  %s608_s17 = smov 0  }
   0x4 LB: > { %s415_s18 = sadd.s32 4294967295, %s571_s17   ;;  %s416_s19 = sadd.s32 4294967294, %s571_s17   ;;  %s571_s17 = sphi %s608_s17, %s16_s17   ;;  %s567_s16 = sphi %s606_s16, %s730_s16   ;;  %s563_s15 = sphi %s604_s15, %s729_s15   ;;  %s559_s14 = sphi %s602_s14, %s728_s14   ;;  %s555_s13 = sphi %s600_s13, %s727_s13   ;;  %s551_s12 = sphi %s598_s12, %s726_s12  }
   0x5   : > { %s28_s20 = sadd.s32 1, %s567_s16  ;;  %s107_s21 = sadd.s32 1, %s559_s14 }
   0x6   : > { %p30_p0 = scmp.ge.s32.totalorder %s28_s20, 2  ;;  %p117_p1 = scmp.ne.s32.totalorder %s559_s14, %s555_s13 }
   0x7   : > { %p118_p2 = scmp.eq.s32.totalorder %s415_s18, 1  ;;  %p123_p3 = scmp.ne.s32.totalorder %s555_s13, %s551_s12 }
   0x8   : > { %s732_s20 = smov (%p30_p0, %s28_s20), 0  ;;  %p124_p5 = scmp.eq.s32.totalorder %s416_s19, 1 }
   0x9   : > { %p638_p4 = por %p118_p2, %p117_p1  ;;  %s102_s23 = ssub.s32 %s567_s16, %s732_s20 }
   0xa   : > { %p419_p6 = scmp.ge.s32.totalorder %s571_s17, 1  ;;  %p105_p7 = scmp.eq.s32.totalorder %s102_s23, 0 }
   0xb   : > { %p645_p8 = por %p124_p5, %p123_p3  ;;  %p161_p9 = scmp.lt.s32.totalorder %s571_s17, 3 }
   0xc   : > { %s651_s25 = scalar_select %p105_p7, %s559_s14, %s107_s21  }
   0xd   : > { %p162_p10 = pnand %p419_p6, %p161_p9 }
   0xe   : > { %v201_v0 = vld [vmem:[%s720_s0] sm:$0xff] (!%p162_p10)  ;;  %v573_v1 = vmov (!%p162_p10), 0   ;;  %v574_v2 = vmov (!%p162_p10), 1   ;;  %v575_v4 = vmov (!%p162_p10), 2   ;;  %v576_v5 = vmov (!%p162_p10), 3   ;;  %p190_p11 = scmp.lt.s32.totalorder (!%p162_p10), %s563_s15, 1 }
   0xf   : > { %165 = sbr.rel (%p162_p10) target bundleno = 174 (0xae), region = 32  ;;  %489 = vset.pattern.permute.xlu0 (!%p162_p10), %v573_v1  ;;  %490 = vset.pattern.permute.xlu1 (!%p162_p10), %v574_v2  ;;  %v202_v3 = vld [vmem:[%s721_s1] sm:$0xff] (!%p162_p10)  ;;  %v209_v6 = vlaneseq (!%p162_p10)  ;;  %s186_s8 = sand.u32 (!%p162_p10), 1, %s555_s13  }
  0x10   : > { %205 = vperm.xlu0 (!%p162_p10), %489, %v201_v0   ;;  %237 = vperm.xlu1 (!%p162_p10), %490, %v201_v0   ;;  %s420_s9 = sshll.u32 (!%p162_p10), %s186_s8, 4  ;;  %s429_s10 = sshll.u32 (!%p162_p10), %s563_s15, 8 }
  0x11   : > { %v210_v7 = vshrl.u32 (!%p162_p10), %v209_v6, 7  ;;  %s188_s11 = scalar_lea.vmem (!%p162_p10), [#allocation2], %s420_s9  ;;  %s671_s23 = scalar_lea.hbm (!%p162_p10), %s723_s3, %s429_s10 }
  0x12   : > { %s339_s18 = sshll.u32 (!%p162_p10), %s188_s11, 4  ;;  %s577_s27 = smov (!%p162_p10), [#allocation2]   ;;  %s673_s18 = int_to_ptr.vmem [resolvable:$true] %s339_s18 }
  0x13   : > { %v211_v8 = vsub.s32 (!%p162_p10), 0, %v210_v7  ;;  %v215_v9 = vsub.s32 (!%p162_p10), 4, %v210_v7  ;;  %v242_v11 = vsub.s32 (!%p162_p10), 1, %v210_v7  ;;  %v246_v12 = vsub.s32 (!%p162_p10), 5, %v210_v7  ;;  %s493_s26 = scalar_lea.vmem (!%p162_p10), %s673_s18, 256  ;;  %s497_s28 = sshll.u32 (!%p162_p10), %s577_s27, 4  ;;  %s498_s28 = int_to_ptr.vmem [resolvable:$false] %s497_s28 }
  0x14   : > { %231 = vperm.xlu0 (!%p162_p10), %489, %v202_v3   ;;  %491 = vset.pattern.permute.xlu1 (!%p162_p10), %v575_v4  ;;  %v268_v13 = vsub.s32 (!%p162_p10), 2, %v210_v7  ;;  %v272_v14 = vsub.s32 (!%p162_p10), 6, %v210_v7  ;;  %v294_v21 = vsub.s32 (!%p162_p10), 3, %v210_v7  ;;  %v298_v22 = vsub.s32 (!%p162_p10), 7, %v210_v7  ;;  %p494_p12 = scmp.ne.s32.totalorder (!%p162_p10), %s673_s18, %s493_s26  ;;  %s499_s29 = scalar_lea.vmem (!%p162_p10), %s498_s28, 512 }
  0x15   : > { %263 = vperm.xlu1 (!%p162_p10), %491, %v201_v0   ;;  %p500_p1 = scmp.lt.s32.totalorder (!%p162_p10), %s673_s18, %s498_s28  ;;  %p501_p2 = scmp.lt.s32.totalorder (!%p162_p10), %s499_s29, %s493_s26 }
  0x16   : > { %s191_s30 = scalar_select %p190_p11, %s563_s15, 1 }
  0x17   : > { %s323_s15 = scalar_lea.sflag [#allocation3], %s186_s8  ;;  %p495_p13 = pnand %p494_p12, %p638_p4 }
  0x18   : > { %492 = vset.pattern.permute.xlu0 %v576_v5  ;;  %s428_s4 = sshll.u32 %s191_s30, 3  ;;  %p502_p3 = por %p501_p2, %p500_p1 }
  0x19   : > { %289 = vperm.xlu0 %492, %v201_v0   ;;  %s197_s7 = scalar_lea.vmem %s722_s2, %s428_s4  ;;  %p496_p0 = pneg %p495_p13 }
  0x1a   : > { %v200_v10 = vld [vmem:[%s197_s7] sm:$0xff] }
  0x1b   : > { %v212_v15 = vrot.slane %v200_v10, %v211_v8  ;;  %v216_v16 = vrot.slane %v200_v10, %v215_v9  ;;  %v243_v17 = vrot.slane %v200_v10, %v242_v11  ;;  %v247_v18 = vrot.slane %v200_v10, %v246_v12  ;;  %p503_p5 = pnand %p502_p3, %p496_p0 }
  0x1c   : > { %v269_v19 = vrot.slane %v200_v10, %v268_v13  ;;  %v273_v20 = vrot.slane %v200_v10, %v272_v14  ;;  %v295_v31 = vrot.slane %v200_v10, %v294_v21  ;;  %v299_v32 = vrot.slane %v200_v10, %v298_v22 }
  0x1d   : > { %v222_v23 = vrot.slane %v212_v15, %v211_v8  ;;  %v226_v24 = vrot.slane %v216_v16, %v211_v8  ;;  %v253_v27 = vrot.slane %v243_v17, %v242_v11  ;;  %v257_v28 = vrot.slane %v247_v18, %v242_v11 }
  0x1e   : > { %v279_v29 = vrot.slane %v269_v19, %v268_v13  ;;  %v283_v30 = vrot.slane %v273_v20, %v268_v13  ;;  %v305_v43 = vrot.slane %v295_v31, %v294_v21  ;;  %v309_v44 = vrot.slane %v299_v32, %v294_v21 }
  0x8f   : > { %v206_v25 = vpop.permute.xlu0 %205  ;;  %v238_v26 = vpop.permute.xlu1 %237 }
  0x90   : > { %v227_v33 = vmul.f32 %v222_v23, %v206_v25  ;;  %v228_v34 = vmul.f32 %v226_v24, %v206_v25  ;;  %v258_v36 = vmul.f32 %v253_v27, %v238_v26  ;;  %v259_v37 = vmul.f32 %v257_v28, %v238_v26 }
  0x93   : > { %v232_v35 = vpop.permute.xlu0 %231 }
  0x94   : > { %v234_v38 = vadd.f32 %v232_v35, %v227_v33  ;;  %v235_v39 = vadd.f32 %v232_v35, %v228_v34  ;;  %v264_v40 = vpop.permute.xlu1 %263 }
  0x95   : > { %v284_v41 = vmul.f32 %v279_v29, %v264_v40  ;;  %v285_v42 = vmul.f32 %v283_v30, %v264_v40 }
  0x96   : > { %v260_v45 = vadd.f32 %v258_v36, %v234_v38  ;;  %v261_v46 = vadd.f32 %v259_v37, %v235_v39 }
  0x98   : > { %v286_v47 = vadd.f32 %v284_v41, %v260_v45  ;;  %v287_v48 = vadd.f32 %v285_v42, %v261_v46  ;;  %v290_v49 = vpop.permute.xlu0 %289 }
  0x99   : > { %v310_v50 = vmul.f32 %v305_v43, %v290_v49  ;;  %v311_v51 = vmul.f32 %v309_v44, %v290_v49 }
  0x9b   : > { %v312_v52 = vadd.f32 %v310_v50, %v286_v47  ;;  %v313_v53 = vadd.f32 %v311_v51, %v287_v48 }
  0x9d   : > { %vm314_vm0 = vcmp.ge.f32.partialorder %v312_v52, 0.0  ;;  %vm315_vm1 = vcmp.ge.f32.partialorder %v313_v53, 0.0  ;;  %v316_v54 = vmul.f32 0.01, %v312_v52  ;;  %v317_v55 = vmul.f32 0.01, %v313_v53 }
  0x9f   : > { %v318_v56 = vsel %vm314_vm0, %v312_v52, %v316_v54  ;;  %v319_v57 = vsel %vm315_vm1, %v313_v53, %v317_v55 }
  0xa0   : > { %320 = vst [vmem:[%s188_s11] sm:$0xff] %v318_v56  ;;  %321 = vst [vmem:[%s188_s11 + $0x8] sm:$0xff] %v319_v57 }
  0xa1   : > { %506 = shalt.err (!%p503_p5)
}
  0xa2   : > { %s507_s30 = scalar_lea.hbm %s671_s23, 256  ;;  %s511_s6 = scalar_lea.hbm %s723_s3, 512 }
  0xa3   : > { %p508_p6 = scmp.ne.s32.totalorder %s671_s23, %s507_s30  ;;  %p512_p10 = scmp.lt.u32.totalorder %s671_s23, %s723_s3 }
  0xa4   : > { %p513_p11 = scmp.lt.u32.totalorder %s511_s6, %s507_s30  ;;  %p515_p13 = scmp.lt.u32.totalorder %s507_s30, %s671_s23 }
  0xa5   : > { %p509_p7 = pnand %p508_p6, %p638_p4 }
  0xa6   : > { %p514_p12 = por %p513_p11, %p512_p10 }
  0xa7   : > { %p510_p9 = pneg %p509_p7 }
  0xa8   : > { %p516_p0 = por %p515_p13, %p514_p12 }
  0xaa   : > { %p517_p1 = pnand %p516_p0, %p510_p9 }
  0xac   : > { %520 = shalt.err (!%p517_p1)
}
  0xad   : > { %430 = dma.vmem_to_hbm [thread:$0]  (%p638_p4), %s673_s18, 256, %s671_s23, %s323_s15  }
  0xae PF: > { %p436_p2 = scmp.ge.s32.totalorder %s571_s17, 2  ;;  %s351_s9 = sand.u32 1, %s551_s12  }
  0xaf   : > { %s352_s10 = scalar_lea.sflag [#allocation3], %s351_s9 }
  0xb0   : > { %p433_p3 = pnand %p436_p2, %p645_p8 }
  0xb2   : > { %546 = dma.done.wait (!%p433_p3), %s352_s10, 256  }
  0xb3   : > { %548 = vsyncadd (!%p433_p3), %s352_s10, 4294967040  ;;  %s16_s17 = sadd.s32 1, %s571_s17   ;;  %s726_s12 = smov %s555_s13 }
  0xb4   : > { %p13_p5 = scmp.ge.s32.totalorder %s16_s17, 4   ;;  %s727_s13 = smov %s559_s14 }
  0xb5   : > { %s728_s14 = smov %s651_s25  ;;  %s729_s15 = smov %s567_s16 }
  0xb6   : > { %s730_s16 = smov %s732_s20  ;;  %15 = sbr.rel (!%p13_p5) target bundleno = 4 (0x4), region = 67 }
  0xbd   :  { %357 = vsyncpa [#allocation3], 1 }
  0xbe   :  { %359 = vsyncpa [#allocation3 + $0x1], 1 }

</bundles_post_ra>
